<compile_context>
chip_gen: v5e
topology: v5e:2x2
jax: 0.10.0
libtpu: 0.0.40
codegen_flags: <defaults>
</compile_context>

<pallas_src>
import jax
import jax.numpy as jnp
import numpy as np
from jax.experimental import pallas as pl
from jax.experimental.pallas import tpu as pltpu


def _round_up(x, m):
    return ((x + m - 1) // m) * m


# --------------------------------------------------------------------------
# One-shot gate kernel: computes gt1, gt2 = sigmoid(MLP(ctx_bias)) * 2 once.
# --------------------------------------------------------------------------
def _gate_kernel(ctx1_ref, ctx2_ref,
                 w1a_ref, b1a_ref, w1b_ref, b1b_ref, w1o_ref, b1o_ref,
                 w2a_ref, b2a_ref, w2b_ref, b2b_ref, w2o_ref, b2o_ref,
                 gt1_ref, gt2_ref):
    def gate(ctx, wa, ba, wb, bb, wo, bo):
        h = jnp.dot(ctx, wa, preferred_element_type=jnp.float32) + ba
        h = jnp.maximum(h, 0.0)
        h = jnp.dot(h, wb, preferred_element_type=jnp.float32) + bb
        h = jnp.maximum(h, 0.0)
        o = jnp.dot(h, wo, preferred_element_type=jnp.float32) + bo
        return jax.nn.sigmoid(o) * 2.0                      # (1, D)

    gt1_ref[...] = gate(ctx1_ref[...],
                        w1a_ref[...], b1a_ref[...],
                        w1b_ref[...], b1b_ref[...],
                        w1o_ref[...], b1o_ref[...])
    gt2_ref[...] = gate(ctx2_ref[...],
                        w2a_ref[...], b2a_ref[...],
                        w2b_ref[...], b2b_ref[...],
                        w2o_ref[...], b2o_ref[...])


# --------------------------------------------------------------------------
# Streaming kernel: feature* = flat_emb_tile * gt*  (pure HBM-bound multiply).
# --------------------------------------------------------------------------
def _apply_gate_kernel(gt1_ref, gt2_ref, flat_ref, feat1_ref, feat2_ref):
    flat = flat_ref[...]                                    # (tile_b, D)
    feat1_ref[...] = flat * gt1_ref[...]                    # (1, D) broadcasts
    feat2_ref[...] = flat * gt2_ref[...]


def feature_selection(flat_emb, params, *, tile_b=512):
    """Pallas implementation of FeatureSelection.forward (empty-context path).

    flat_emb: (B, D) float32
    params:   dict with fs{1,2}_ctx_bias (1, E), gate/out weights stored as
              (in, out) and biases stored as (1, out).
    Returns (feature1, feature2), each (B, D) float32.
    """
    B, D = flat_emb.shape
    dtype = jnp.float32

    # ---- gates: grid-invariant, computed once in a tiny one-shot call ------
    gt1, gt2 = pl.pallas_call(
        _gate_kernel,
        out_shape=(jax.ShapeDtypeStruct((1, D), dtype),
                   jax.ShapeDtypeStruct((1, D), dtype)),
    )(params["fs1_ctx_bias"], params["fs2_ctx_bias"],
      params["fs1_w_a"], params["fs1_b_a"],
      params["fs1_w_b"], params["fs1_b_b"],
      params["fs1_w_o"], params["fs1_b_o"],
      params["fs2_w_a"], params["fs2_b_a"],
      params["fs2_w_b"], params["fs2_b_b"],
      params["fs2_w_o"], params["fs2_b_o"])

    # ---- batch tile choice --------------------------------------------------
    # (a) keep >= 2 grid steps so dimension_semantics=("parallel",) can use
    #     both v7x TensorCores; (b) keep the double-buffered VMEM footprint
    #     (3 streaming arrays x 2 buffers x tile_b x D x 4B) under ~36 MiB;
    # (c) sublane-align to 8.
    tile_b = max(8, min(_round_up(tile_b, 8), _round_up(pl.cdiv(B, 2), 8)))
    vmem_budget = 36 * 1024 * 1024
    max_tile = max(8, (vmem_budget // (6 * D * 4)) // 8 * 8)
    tile_b = min(tile_b, max_tile)

    grid = (pl.cdiv(B, tile_b),)          # ragged last block handled by Pallas

    batch_spec = pl.BlockSpec((tile_b, D), lambda i: (i, 0))
    gate_spec = pl.BlockSpec((1, D), lambda i: (0, 0))

    feat1, feat2 = pl.pallas_call(
        _apply_gate_kernel,
        grid=grid,
        in_specs=[gate_spec, gate_spec, batch_spec],
        out_specs=(batch_spec, batch_spec),
        out_shape=(jax.ShapeDtypeStruct((B, D), dtype),
                   jax.ShapeDtypeStruct((B, D), dtype)),
        compiler_params=pltpu.CompilerParams(
            dimension_semantics=("parallel",),
            vmem_limit_bytes=48 * 1024 * 1024),
    )(gt1, gt2, flat_emb)

    return feat1, feat2


def feature_selection_ref(flat_emb, params):
    """Pure-JAX reference mirroring the PyTorch forward (empty-context path)."""
    B = flat_emb.shape[0]
    E = params["fs1_ctx_bias"].shape[1]

    def branch(prefix, ctx_bias):
        x = jnp.broadcast_to(ctx_bias, (B, E))
        h = jnp.maximum(x @ params[f"{prefix}_w_a"] + params[f"{prefix}_b_a"], 0.0)
        h = jnp.maximum(h @ params[f"{prefix}_w_b"] + params[f"{prefix}_b_b"], 0.0)
        o = h @ params[f"{prefix}_w_o"] + params[f"{prefix}_b_o"]
        return jax.nn.sigmoid(o) * 2.0

    gt1 = branch("fs1", params["fs1_ctx_bias"])
    gt2 = branch("fs2", params["fs2_ctx_bias"])
    return flat_emb * gt1, flat_emb * gt2


def make_params(key, embedding_dim, fs_hidden_units, feature_dim):
    """Deterministic synthetic parameters (shapes follow the PyTorch __init__)."""
    E = embedding_dim
    H1, H2 = fs_hidden_units
    D = feature_dim
    ks = jax.random.split(key, 8)

    def xavier(k, fan_in, fan_out):
        std = float(np.sqrt(2.0 / (fan_in + fan_out)))
        # stored as (in, out) = transpose of torch.nn.Linear.weight
        return jax.random.normal(k, (fan_in, fan_out), jnp.float32) * std

    return {
        # torch init is zeros; use small deterministic values so the gate is
        # non-trivial while remaining a (1, E) learnable bias.
        "fs1_ctx_bias": 0.1 * jax.random.normal(ks[0], (1, E), jnp.float32),
        "fs2_ctx_bias": 0.1 * jax.random.normal(ks[1], (1, E), jnp.float32),
        "fs1_w_a": xavier(ks[2], E, H1),  "fs1_b_a": jnp.zeros((1, H1), jnp.float32),
        "fs1_w_b": xavier(ks[3], H1, H2), "fs1_b_b": jnp.zeros((1, H2), jnp.float32),
        "fs1_w_o": xavier(ks[4], H2, D),  "fs1_b_o": jnp.zeros((1, D), jnp.float32),
        "fs2_w_a": xavier(ks[5], E, H1),  "fs2_b_a": jnp.zeros((1, H1), jnp.float32),
        "fs2_w_b": xavier(ks[6], H1, H2), "fs2_b_b": jnp.zeros((1, H2), jnp.float32),
        "fs2_w_o": xavier(ks[7], H2, D),  "fs2_b_o": jnp.zeros((1, D), jnp.float32),
    }


if __name__ == "__main__":
    key = jax.random.PRNGKey(0)

    B = 512                 # batch -> tile_b clamps to 256, grid = 2 parallel steps
    embedding_dim = 32      # per-field embedding size
    num_fields = 8
    feature_dim = num_fields * embedding_dim   # = 256, width of flat_emb
    fs_hidden_units = [64, 32]

    k_emb, k_par = jax.random.split(key)
    flat_emb = jax.random.normal(k_emb, (B, feature_dim), jnp.float32)
    params = make_params(k_par, embedding_dim, fs_hidden_units, feature_dim)

    feat1, feat2 = feature_selection(flat_emb, params)
    feat1 = jax.block_until_ready(feat1)
    feat2 = jax.block_until_ready(feat2)

    ref1, ref2 = feature_selection_ref(flat_emb, params)
    np.testing.assert_allclose(np.asarray(feat1), np.asarray(ref1), rtol=1e-5, atol=1e-5)
    np.testing.assert_allclose(np.asarray(feat2), np.asarray(ref2), rtol=1e-5, atol=1e-5)

    print("KERNEL_OK")
</pallas_src>

<mosaic_0001>
module attributes {stable_mosaic.version = 11 : i64} {
  func.func @_gate_kernel(%arg0: memref<1x32xf32, #tpu.memory_space<vmem>>, %arg1: memref<1x32xf32, #tpu.memory_space<vmem>>, %arg2: memref<32x64xf32, #tpu.memory_space<vmem>>, %arg3: memref<1x64xf32, #tpu.memory_space<vmem>>, %arg4: memref<64x32xf32, #tpu.memory_space<vmem>>, %arg5: memref<1x32xf32, #tpu.memory_space<vmem>>, %arg6: memref<32x256xf32, #tpu.memory_space<vmem>>, %arg7: memref<1x256xf32, #tpu.memory_space<vmem>>, %arg8: memref<32x64xf32, #tpu.memory_space<vmem>>, %arg9: memref<1x64xf32, #tpu.memory_space<vmem>>, %arg10: memref<64x32xf32, #tpu.memory_space<vmem>>, %arg11: memref<1x32xf32, #tpu.memory_space<vmem>>, %arg12: memref<32x256xf32, #tpu.memory_space<vmem>>, %arg13: memref<1x256xf32, #tpu.memory_space<vmem>>, %arg14: memref<1x256xf32, #tpu.memory_space<vmem>>, %arg15: memref<1x256xf32, #tpu.memory_space<vmem>>) attributes {dimension_semantics = [], scalar_prefetch = 0 : i64, scratch_operands = 0 : i64, tpu.core_type = #tpu.core_type<tc>} {
    %c0 = arith.constant 0 : index
    %c0_0 = arith.constant 0 : index
    %0 = vector.load %arg0[%c0, %c0_0] : memref<1x32xf32, #tpu.memory_space<vmem>>, vector<1x32xf32>
    %c0_1 = arith.constant 0 : index
    %c0_2 = arith.constant 0 : index
    %1 = vector.load %arg2[%c0_1, %c0_2] : memref<32x64xf32, #tpu.memory_space<vmem>>, vector<32x64xf32>
    %c0_3 = arith.constant 0 : index
    %c0_4 = arith.constant 0 : index
    %2 = vector.load %arg3[%c0_3, %c0_4] : memref<1x64xf32, #tpu.memory_space<vmem>>, vector<1x64xf32>
    %c0_5 = arith.constant 0 : index
    %c0_6 = arith.constant 0 : index
    %3 = vector.load %arg4[%c0_5, %c0_6] : memref<64x32xf32, #tpu.memory_space<vmem>>, vector<64x32xf32>
    %c0_7 = arith.constant 0 : index
    %c0_8 = arith.constant 0 : index
    %4 = vector.load %arg5[%c0_7, %c0_8] : memref<1x32xf32, #tpu.memory_space<vmem>>, vector<1x32xf32>
    %c0_9 = arith.constant 0 : index
    %c0_10 = arith.constant 0 : index
    %5 = vector.load %arg6[%c0_9, %c0_10] : memref<32x256xf32, #tpu.memory_space<vmem>>, vector<32x256xf32>
    %c0_11 = arith.constant 0 : index
    %c0_12 = arith.constant 0 : index
    %6 = vector.load %arg7[%c0_11, %c0_12] : memref<1x256xf32, #tpu.memory_space<vmem>>, vector<1x256xf32>
    %cst = arith.constant dense<0.000000e+00> : vector<1x64xf32>
    %7 = tpu.matmul %0, %1, %cst {dimension_numbers = #tpu.dot_dimension_numbers<[1], [0], [0], [1], [0, 0, 1, 1], [], []>} : vector<1x32xf32>, vector<32x64xf32>, vector<1x64xf32> -> vector<1x64xf32>
    %8 = arith.addf %7, %2 : vector<1x64xf32>
    %cst_13 = arith.constant 0.000000e+00 : f32
    %9 = vector.broadcast %cst_13 : f32 to vector<1x64xf32>
    %10 = arith.maximumf %8, %9 : vector<1x64xf32>
    %cst_14 = arith.constant dense<0.000000e+00> : vector<1x32xf32>
    %11 = tpu.matmul %10, %3, %cst_14 {dimension_numbers = #tpu.dot_dimension_numbers<[1], [0], [0], [1], [0, 0, 1, 1], [], []>} : vector<1x64xf32>, vector<64x32xf32>, vector<1x32xf32> -> vector<1x32xf32>
    %12 = arith.addf %11, %4 : vector<1x32xf32>
    %cst_15 = arith.constant 0.000000e+00 : f32
    %13 = vector.broadcast %cst_15 : f32 to vector<1x32xf32>
    %14 = arith.maximumf %12, %13 : vector<1x32xf32>
    %cst_16 = arith.constant dense<0.000000e+00> : vector<1x256xf32>
    %15 = tpu.matmul %14, %5, %cst_16 {dimension_numbers = #tpu.dot_dimension_numbers<[1], [0], [0], [1], [0, 0, 1, 1], [], []>} : vector<1x32xf32>, vector<32x256xf32>, vector<1x256xf32> -> vector<1x256xf32>
    %16 = arith.addf %15, %6 : vector<1x256xf32>
    %17 = arith.negf %16 : vector<1x256xf32>
    %18 = math.exp %17 : vector<1x256xf32>
    %cst_17 = arith.constant 1.000000e+00 : f32
    %19 = vector.broadcast %cst_17 : f32 to vector<1x256xf32>
    %20 = arith.addf %19, %18 : vector<1x256xf32>
    %21 = arith.divf %19, %20 : vector<1x256xf32>
    %cst_18 = arith.constant 2.000000e+00 : f32
    %22 = vector.broadcast %cst_18 : f32 to vector<1x256xf32>
    %23 = arith.mulf %21, %22 : vector<1x256xf32>
    %c0_19 = arith.constant 0 : index
    %c0_20 = arith.constant 0 : index
    %24 = vector.load %arg14[%c0_19, %c0_20] : memref<1x256xf32, #tpu.memory_space<vmem>>, vector<1x256xf32>
    tpu.vector_store %arg14[%c0_19, %c0_20], %23 {strides = array<i32>} : memref<1x256xf32, #tpu.memory_space<vmem>>, vector<1x256xf32>,
    %c0_21 = arith.constant 0 : index
    %c0_22 = arith.constant 0 : index
    %25 = vector.load %arg1[%c0_21, %c0_22] : memref<1x32xf32, #tpu.memory_space<vmem>>, vector<1x32xf32>
    %c0_23 = arith.constant 0 : index
    %c0_24 = arith.constant 0 : index
    %26 = vector.load %arg8[%c0_23, %c0_24] : memref<32x64xf32, #tpu.memory_space<vmem>>, vector<32x64xf32>
    %c0_25 = arith.constant 0 : index
    %c0_26 = arith.constant 0 : index
    %27 = vector.load %arg9[%c0_25, %c0_26] : memref<1x64xf32, #tpu.memory_space<vmem>>, vector<1x64xf32>
    %c0_27 = arith.constant 0 : index
    %c0_28 = arith.constant 0 : index
    %28 = vector.load %arg10[%c0_27, %c0_28] : memref<64x32xf32, #tpu.memory_space<vmem>>, vector<64x32xf32>
    %c0_29 = arith.constant 0 : index
    %c0_30 = arith.constant 0 : index
    %29 = vector.load %arg11[%c0_29, %c0_30] : memref<1x32xf32, #tpu.memory_space<vmem>>, vector<1x32xf32>
    %c0_31 = arith.constant 0 : index
    %c0_32 = arith.constant 0 : index
    %30 = vector.load %arg12[%c0_31, %c0_32] : memref<32x256xf32, #tpu.memory_space<vmem>>, vector<32x256xf32>
    %c0_33 = arith.constant 0 : index
    %c0_34 = arith.constant 0 : index
    %31 = vector.load %arg13[%c0_33, %c0_34] : memref<1x256xf32, #tpu.memory_space<vmem>>, vector<1x256xf32>
    %cst_35 = arith.constant dense<0.000000e+00> : vector<1x64xf32>
    %32 = tpu.matmul %25, %26, %cst_35 {dimension_numbers = #tpu.dot_dimension_numbers<[1], [0], [0], [1], [0, 0, 1, 1], [], []>} : vector<1x32xf32>, vector<32x64xf32>, vector<1x64xf32> -> vector<1x64xf32>
    %33 = arith.addf %32, %27 : vector<1x64xf32>
    %cst_36 = arith.constant 0.000000e+00 : f32
    %34 = vector.broadcast %cst_36 : f32 to vector<1x64xf32>
    %35 = arith.maximumf %33, %34 : vector<1x64xf32>
    %cst_37 = arith.constant dense<0.000000e+00> : vector<1x32xf32>
    %36 = tpu.matmul %35, %28, %cst_37 {dimension_numbers = #tpu.dot_dimension_numbers<[1], [0], [0], [1], [0, 0, 1, 1], [], []>} : vector<1x64xf32>, vector<64x32xf32>, vector<1x32xf32> -> vector<1x32xf32>
    %37 = arith.addf %36, %29 : vector<1x32xf32>
    %cst_38 = arith.constant 0.000000e+00 : f32
    %38 = vector.broadcast %cst_38 : f32 to vector<1x32xf32>
    %39 = arith.maximumf %37, %38 : vector<1x32xf32>
    %cst_39 = arith.constant dense<0.000000e+00> : vector<1x256xf32>
    %40 = tpu.matmul %39, %30, %cst_39 {dimension_numbers = #tpu.dot_dimension_numbers<[1], [0], [0], [1], [0, 0, 1, 1], [], []>} : vector<1x32xf32>, vector<32x256xf32>, vector<1x256xf32> -> vector<1x256xf32>
    %41 = arith.addf %40, %31 : vector<1x256xf32>
    %42 = arith.negf %41 : vector<1x256xf32>
    %43 = math.exp %42 : vector<1x256xf32>
    %cst_40 = arith.constant 1.000000e+00 : f32
    %44 = vector.broadcast %cst_40 : f32 to vector<1x256xf32>
    %45 = arith.addf %44, %43 : vector<1x256xf32>
    %46 = arith.divf %44, %45 : vector<1x256xf32>
    %cst_41 = arith.constant 2.000000e+00 : f32
    %47 = vector.broadcast %cst_41 : f32 to vector<1x256xf32>
    %48 = arith.mulf %46, %47 : vector<1x256xf32>
    %c0_42 = arith.constant 0 : index
    %c0_43 = arith.constant 0 : index
    %49 = vector.load %arg15[%c0_42, %c0_43] : memref<1x256xf32, #tpu.memory_space<vmem>>, vector<1x256xf32>
    tpu.vector_store %arg15[%c0_42, %c0_43], %48 {strides = array<i32>} : memref<1x256xf32, #tpu.memory_space<vmem>>, vector<1x256xf32>,
    return
  }
}

</mosaic_0001>

<bundles_post_ra>
// kernel: tpu_custom_call.1
= control target key start
LH: loop header
LB: loop body
LE: loop exit
PB: predicated region body
PF: predicated region fallthrough
CT: control target
= control target key end

     0   :  { %21 = vsyncpa [#allocation3], 0  ;;  %s958_s0 = inlined_call_operand.hbm [shape: f32[1,32], index: 0, kind: input, shape index: {}]   ;;  %s959_s1 = inlined_call_operand.hbm [shape: f32[1,32], index: 1, kind: input, shape index: {}]   ;;  %s960_s2 = inlined_call_operand.vmem [shape: f32[32,64], index: 2, kind: input, shape index: {}]   ;;  %s961_s3 = inlined_call_operand.hbm [shape: f32[1,64], index: 3, kind: input, shape index: {}]   ;;  %s962_s4 = inlined_call_operand.vmem [shape: f32[64,32], index: 4, kind: input, shape index: {}]   ;;  %s963_s5 = inlined_call_operand.hbm [shape: f32[1,32], index: 5, kind: input, shape index: {}]   ;;  %s964_s6 = inlined_call_operand.vmem [shape: f32[32,256], index: 6, kind: input, shape index: {}]   ;;  %s965_s7 = inlined_call_operand.vmem [shape: f32[1,256], index: 7, kind: input, shape index: {}]   ;;  %s966_s8 = inlined_call_operand.hbm [shape: f32[32,64], index: 8, kind: input, shape index: {}]   ;;  %s967_s9 = inlined_call_operand.vmem [shape: f32[1,64], index: 9, kind: input, shape index: {}]   ;;  %s968_s10 = inlined_call_operand.vmem [shape: f32[64,32], index: 10, kind: input, shape index: {}]   ;;  %s969_s11 = inlined_call_operand.vmem [shape: f32[1,32], index: 11, kind: input, shape index: {}]   ;;  %s970_s12 = inlined_call_operand.vmem [shape: f32[32,256], index: 12, kind: input, shape index: {}]   ;;  %s971_s13 = inlined_call_operand.vmem [shape: f32[1,256], index: 13, kind: input, shape index: {}]   ;;  %s972_s14 = inlined_call_operand.hbm [shape: f32[1,256], index: 14, kind: output, shape index: {0}]   ;;  %s973_s15 = inlined_call_operand.hbm [shape: f32[1,256], index: 15, kind: output, shape index: {1}]  }
   0x1   :  { %22 = vsyncpa [#allocation6], 0 }
   0x2   :  { %23 = vsyncpa [#allocation9], 0 }
   0x3   :  { %24 = vsyncpa [#allocation4], 0  ;;  %s42_s20 = sshll.u32 %s959_s1, 4  ;;  %s43_s20 = int_to_ptr.hbm [resolvable:$true] %s42_s20 }
   0x4   :  { %25 = vsyncpa [#allocation13], 0  ;;  %s710_s21 = smov [#allocation5]   ;;  %s68_s25 = sshll.u32 %s963_s5, 4  ;;  %s69_s25 = int_to_ptr.hbm [resolvable:$true] %s68_s25 }
   0x5   :  { %s44_s22 = sshll.u32 %s710_s21, 4  ;;  %s711_s26 = smov [#allocation8]   ;;  %s45_s22 = int_to_ptr.vmem [resolvable:$true] %s44_s22 }
   0x6   :  { %47 = dma.hbm_to_vmem [thread:$0]  %s43_s20, 16, %s45_s22, [#allocation6]  }
   0x7   :  { %s70_s27 = sshll.u32 %s711_s26, 4  ;;  %s31_s30 = sshll.u32 %s958_s0, 4  ;;  %s71_s27 = int_to_ptr.vmem [resolvable:$true] %s70_s27  ;;  %s32_s30 = int_to_ptr.hbm [resolvable:$true] %s31_s30 }
   0x8   :  { %73 = dma.hbm_to_vmem [thread:$0]  %s69_s25, 16, %s71_s27, [#allocation9]  }
   0x9   :  { %s55_s17 = sshll.u32 %s961_s3, 4  ;;  %s712_s18 = smov [#allocation2]   ;;  %s56_s17 = int_to_ptr.hbm [resolvable:$true] %s55_s17 }
   0xa   :  { %s33_s19 = sshll.u32 %s712_s18, 4  ;;  %s713_s5 = smov [#allocation7]   ;;  %s34_s19 = int_to_ptr.vmem [resolvable:$true] %s33_s19 }
   0xb   :  { %36 = dma.hbm_to_vmem [thread:$0]  %s32_s30, 16, %s34_s19, [#allocation3]  }
   0xc   :  { %s57_s20 = sshll.u32 %s713_s5, 4  ;;  %s82_s23 = sshll.u32 %s966_s8, 4  ;;  %s58_s20 = int_to_ptr.vmem [resolvable:$true] %s57_s20  ;;  %s83_s23 = int_to_ptr.hbm [resolvable:$true] %s82_s23 }
   0xd   :  { %60 = dma.hbm_to_vmem [thread:$0]  %s56_s17, 16, %s58_s20, [#allocation6]  }
   0xe   :  { %s714_s0 = smov [#allocation10]   ;;  %s715_s25 = smov 128  }
   0xf   :  { %s84_s24 = sshll.u32 %s714_s0, 4  ;;  %s716_s26 = smov 8   ;;  %s85_s24 = int_to_ptr.vmem [resolvable:$true] %s84_s24 }
  0x10   :  { %90 = dma.hbm_to_vmem [thread:$0]  %s83_s23, 512, %s85_s24, [#allocation9], %s715_s25, %s715_s25, %s716_s26  }
  0x11   :  { %700 = dma.done.wait [#allocation3], 16  }
  0x12   :  { %701 = vsyncadd [#allocation3], 4294967280 }
  0x13   :  { %702 = dma.done.wait [#allocation6], 32  }
  0x14   :  { %703 = vsyncadd [#allocation6], 4294967264 }
  0x15   :  { %704 = dma.done.wait [#allocation9], 528  }
  0x16   :  { %705 = vsyncadd [#allocation9], 4294966768  ;;  %v125_v0 = vld [vmem:[%s960_s2 + $0x18] sm:$0xff]  ;;  %v124_v1 = vld [vmem:[%s960_s2 + $0x10] sm:$0xff]  ;;  %vm145_vm0 = vcmask 261120   ;;  %vm170_vm1 = vcmask 523264  }
  0x17   :  { %161 = vmatpush.msra.mxu0 %v125_v0  ;;  %v134_v2 = vld [vmem:[%s962_s4 + $0x38] sm:$0xff]  ;;  %v123_v3 = vld [vmem:[%s960_s2 + $0x8] sm:$0xff]  ;;  %v133_v4 = vld [vmem:[%s962_s4 + $0x30] sm:$0xff]  ;;  %vm286_vm10 = vcmask 1040384   ;;  %s717_s18 = smov [#allocation11]   ;;  %s478_s21 = sshll.u32 %s973_s15, 4  ;;  %s479_s21 = int_to_ptr.hbm [resolvable:$true] %s478_s21 }
  0x18   :  { %182 = vmatpush.msra.mxu1 %v134_v2  ;;  %v132_v5 = vld [vmem:[%s962_s4 + $0x28] sm:$0xff]  ;;  %v122_v6 = vld [vmem:[%s960_s2] sm:$0xff]  ;;  %v130_v9 = vld [vmem:[%s962_s4 + $0x18] sm:$0xff] }
  0x19   :  { %162 = vmatpush.msra.mxu0 %v124_v1  ;;  %v121_v7 = vld [vmem:[#allocation2] sm:$0x1]  ;;  %v129_v10 = vld [vmem:[%s962_s4 + $0x10] sm:$0xff]  ;;  %v128_v11 = vld [vmem:[%s962_s4 + $0x8] sm:$0xff] }
  0x1a   :  { %183 = vmatpush.msra.mxu1 %v133_v4  ;;  %v131_v8 = vld [vmem:[%s962_s4 + $0x20] sm:$0xff]  ;;  %v297_v14 = vld [vmem:[#allocation10 + $0x10] sm:$0xff]  ;;  %v142_v15 = vld [vmem:[%s964_s6 + $0x30] sm:$0xff] }
  0x1b   :  { %163 = vmatpush.msra.mxu0 %v123_v3  ;;  %v127_v12 = vld [vmem:[%s962_s4] sm:$0xff]  ;;  %v296_v16 = vld [vmem:[#allocation10 + $0x8] sm:$0xff]  ;;  %215 = vmatpush.msra.mxu2 %v142_v15  ;;  %v143_v19 = vld [vmem:[%s964_s6 + $0x38] sm:$0xff] }
  0x1c   :  { %184 = vmatpush.msra.mxu1 %v132_v5  ;;  %v298_v13 = vld [vmem:[#allocation10 + $0x18] sm:$0xff]  ;;  %v138_v18 = vld [vmem:[%s964_s6 + $0x10] sm:$0xff]  ;;  %v295_v20 = vld [vmem:[#allocation10] sm:$0xff]  ;;  %235 = vmatpush.msra.mxu3 %v143_v19 }
  0x1d   :  { %164 = vmatpush.msra.mxu0 %v122_v6  ;;  %v140_v17 = vld [vmem:[%s964_s6 + $0x20] sm:$0xff]  ;;  %v307_v23 = vld [vmem:[%s968_s10 + $0x38] sm:$0xff]  ;;  %v141_v28 = vld [vmem:[%s964_s6 + $0x28] sm:$0xff] }
  0x1e   :  { %495 = vmatmul.msk.f32.vlgmr.msra.gmra.mxu0 %vm145_vm0, %v121_v7  ;;  %185 = vmatpush.msra.mxu1 %v131_v8  ;;  %v294_v21 = vld [vmem:[#allocation5] sm:$0x1]  ;;  %v126_v24 = vld [vmem:[#allocation7] sm:$0x1]  ;;  %v306_v29 = vld [vmem:[%s968_s10 + $0x30] sm:$0xff] }
  0x1f   :  { %333 = vmatpush.msrb.mxu0 %v298_v13  ;;  %216 = vmatpush.msra.mxu2 %v140_v17  ;;  %v136_v22 = vld [vmem:[%s964_s6] sm:$0xff]  ;;  %v139_v30 = vld [vmem:[%s964_s6 + $0x18] sm:$0xff]  ;;  %v305_v31 = vld [vmem:[%s968_s10 + $0x28] sm:$0xff] }
  0x20   :  { %186 = vmatpush.msra.mxu1 %v130_v9  ;;  %236 = vmatpush.msra.mxu3 %v141_v28  ;;  %v137_v32 = vld [vmem:[%s964_s6 + $0x8] sm:$0xff]  ;;  %v304_v33 = vld [vmem:[%s968_s10 + $0x20] sm:$0xff]  ;;  %v303_v34 = vld [vmem:[%s968_s10 + $0x18] sm:$0xff]  ;;  %s465_s6 = sshll.u32 %s717_s18, 4  ;;  %s466_s6 = int_to_ptr.vmem [resolvable:$true] %s465_s6 }
  0x21   :  { %334 = vmatpush.msrb.mxu0 %v297_v14  ;;  %217 = vmatpush.msra.mxu2 %v138_v18  ;;  %v302_v35 = vld [vmem:[%s968_s10 + $0x10] sm:$0xff]  ;;  %v301_v36 = vld [vmem:[%s968_s10 + $0x8] sm:$0xff]  ;;  %v300_v37 = vld [vmem:[%s968_s10] sm:$0xff] }
  0x22   :  { %187 = vmatpush.msra.mxu1 %v129_v10  ;;  %237 = vmatpush.msra.mxu3 %v139_v30  ;;  %v135_v38 = vld [vmem:[#allocation8] sm:$0x1]  ;;  %v299_v41 = vld [vmem:[%s967_s9] sm:$0x1]  ;;  %v315_v46 = vld [vmem:[%s970_s12 + $0x30] sm:$0xff] }
  0x23   :  { %335 = vmatpush.msrb.mxu0 %v296_v16  ;;  %218 = vmatpush.msra.mxu2 %v136_v22  ;;  %v316_v47 = vld [vmem:[%s970_s12 + $0x38] sm:$0xff]  ;;  %v313_v48 = vld [vmem:[%s970_s12 + $0x20] sm:$0xff]  ;;  %v314_v49 = vld [vmem:[%s970_s12 + $0x28] sm:$0xff] }
  0x24   :  { %188 = vmatpush.msra.mxu1 %v128_v11  ;;  %238 = vmatpush.msra.mxu3 %v137_v32  ;;  %v311_v50 = vld [vmem:[%s970_s12 + $0x10] sm:$0xff]  ;;  %v312_v51 = vld [vmem:[%s970_s12 + $0x18] sm:$0xff]  ;;  %v309_v52 = vld [vmem:[%s970_s12] sm:$0xff] }
  0x25   :  { %336 = vmatpush.msrb.mxu0 %v295_v20  ;;  %353 = vmatpush.msrb.mxu2 %v307_v23  ;;  %v310_v53 = vld [vmem:[%s970_s12 + $0x8] sm:$0xff]  ;;  %v144_v54 = vld [vmem:[%s965_s7] sm:$0x3]  ;;  %s467_s12 = sshll.u32 %s972_s14, 4  ;;  %s468_s12 = int_to_ptr.hbm [resolvable:$true] %s467_s12 }
  0x26   :  { %189 = vmatpush.msra.mxu1 %v127_v12  ;;  %501 = vmatmul.msk.f32.vlgmr.msrb.gmra.mxu0 %vm145_vm0, %v294_v21  ;;  %v196_v55 = vperm.slane %v144_v54, 0  ;;  %v197_v56 = vperm.slane %v144_v54, 1  ;;  %v308_v63 = vld [vmem:[%s969_s11] sm:$0x1] }
  0x27   :  { %354 = vmatpush.msrb.mxu2 %v306_v29  ;;  %386 = vmatpush.msrb.mxu3 %v315_v46 }
  0x28   :  { %406 = vmatpush.msra.mxu0 %v316_v47 }
  0x29   :  { %355 = vmatpush.msrb.mxu2 %v305_v31  ;;  %387 = vmatpush.msrb.mxu3 %v313_v48 }
  0x2a   :  { %407 = vmatpush.msra.mxu0 %v314_v49 }
  0x2b   :  { %356 = vmatpush.msrb.mxu2 %v304_v33  ;;  %388 = vmatpush.msrb.mxu3 %v311_v50  ;;  %v317_v33 = vld [vmem:[%s971_s13] sm:$0x3]  ;;  %s718_s13 = smov [#allocation12]  }
  0x2c   :  { %408 = vmatpush.msra.mxu0 %v312_v51  ;;  %s476_s14 = sshll.u32 %s718_s13, 4  ;;  %s477_s14 = int_to_ptr.vmem [resolvable:$true] %s476_s14 }
  0x2d   :  { %357 = vmatpush.msrb.mxu2 %v303_v34  ;;  %389 = vmatpush.msrb.mxu3 %v309_v52  ;;  %v368_v34 = vperm.slane %v317_v33, 1 }
  0x2e   :  { %409 = vmatpush.msra.mxu0 %v310_v53 }
  0x2f   :  { %358 = vmatpush.msrb.mxu2 %v302_v35 }
  0x31   :  { %359 = vmatpush.msrb.mxu2 %v301_v36 }
  0x33   :  { %360 = vmatpush.msrb.mxu2 %v300_v37 }
  0x9b   :  { %v166_v25 = vpop.f32.mrf.mxu0 }
  0x9c   :  { %v167_v26 = vadd.f32 %v166_v25, %v126_v24  ;;  %v289_v25 = vlaneseq }
  0x9e   :  { %v169_v27 = vmax.f32 %v167_v26, 0.0  ;;  %vm939_vm11 = vcmp.lt.s32.totalorder %v289_v25, 256 }
  0xa0   :  { %496 = vmatmul.msk.f32.vlgmr.msra.gmra.mxu1 %vm170_vm1, %v169_v27 }
  0xa3   :  { %v338_v42 = vpop.f32.mrf.mxu0 }
  0xa4   :  { %v339_v44 = vadd.f32 %v338_v42, %v299_v41 }
  0xa6   :  { %v341_v45 = vmax.f32 %v339_v44, 0.0 }
 0x11d   :  { %v191_v39 = vpop.f32.mrf.mxu1 }
 0x11e   :  { %v192_v40 = vadd.f32 %v191_v39, %v135_v38  ;;  %v367_v38 = vperm.slane %v317_v33, 0 }
 0x120   :  { %v194_v43 = vmax.f32 %v192_v40, 0.0 }
 0x122   :  { %497 = vmatmul.msk.f32.vlgmr.msra.gmra.mxu2 %vm145_vm0, %v194_v43  ;;  %498 = vmatmul.msk.f32.vlgmr.msra.gmra.mxu3 %vm145_vm0, %v194_v43 }
 0x12a   :  { %502 = vmatmul.msk.f32.vlgmr.msrb.gmra.mxu2 %vm170_vm1, %v341_v45 }
 0x1a5   :  { %v220_v57 = vpop.f32.mrf.mxu2  ;;  %v240_v58 = vpop.f32.mrf.mxu3 }
 0x1a6   :  { %v221_v59 = vadd.f32 %v220_v57, %v196_v55  ;;  %v241_v60 = vadd.f32 %v240_v58, %v197_v56 }
 0x1a8   :  { %v499_v61 = vmul.f32 -1.442695, %v221_v59  ;;  %v500_v62 = vmul.f32 -1.442695, %v241_v60 }
 0x1aa   :  { %516 = vpow2.f32 %v499_v61 }
 0x1ab   :  { %518 = vpow2.f32 %v500_v62 }
 0x1ad   :  { %v362_v0 = vpop.f32.mrf.mxu2 }
 0x1ae   :  { %v363_v1 = vadd.f32 %v362_v0, %v308_v63 }
 0x1b0   :  { %v517_v2 = vpop.eup %516  ;;  %v365_v3 = vmax.f32 %v363_v1, 0.0 }
 0x1b1   :  { %v519_v4 = vpop.eup %518  ;;  %v249_v5 = vadd.f32 1.0, %v517_v2 }
 0x1b2   :  { %v250_v6 = vadd.f32 1.0, %v519_v4  ;;  %503 = vmatmul.msk.f32.vlgmr.msrb.gmra.mxu3 %vm145_vm0, %v365_v3  ;;  %504 = vmatmul.msk.f32.vlgmr.msra.gmra.mxu0 %vm145_vm0, %v365_v3 }
 0x1b3   :  { %520 = vrcp.f32 %v249_v5  ;;  %v262_v15 = vand.u32 2147483648, %v249_v5  ;;  %v260_v17 = vand.u32 2147483647, %v249_v5  ;;  %vm256_vm4 = vweird.f32 %v249_v5 }
 0x1b4   :  { %522 = vrcp.f32 %v250_v6  ;;  %v277_v14 = vand.u32 2147483648, %v250_v6  ;;  %v275_v18 = vand.u32 2147483647, %v250_v6  ;;  %vm271_vm5 = vweird.f32 %v250_v6 }
 0x1b5   :  { %v263_v22 = vor.u32 1.1754944e-38, %v262_v15  ;;  %vm261_vm8 = vcmp.eq.f32.partialorder %v260_v17, 8.507059e+37 }
 0x1b6   :  { %v278_v23 = vor.u32 1.1754944e-38, %v277_v14  ;;  %vm276_vm9 = vcmp.eq.f32.partialorder %v275_v18, 8.507059e+37 }
 0x1b9   :  { %v521_v7 = vpop.eup %520 }
 0x1ba   :  { %v523_v8 = vpop.eup %522  ;;  %v252_v9 = vmul.f32 %v521_v7, %v249_v5  ;;  %vm257_vm2 = vweird.f32 %v521_v7 }
 0x1bb   :  { %v267_v10 = vmul.f32 %v523_v8, %v250_v6  ;;  %vm272_vm3 = vweird.f32 %v523_v8  ;;  %vm258_vm6 = vmor %vm256_vm4, %vm257_vm2 }
 0x1bc   :  { %v253_v11 = vsub.f32 1.0, %v252_v9  ;;  %vm273_vm7 = vmor %vm271_vm5, %vm272_vm3 }
 0x1bd   :  { %v268_v12 = vsub.f32 1.0, %v267_v10 }
 0x1be   :  { %v254_v13 = vmul.f32 %v521_v7, %v253_v11 }
 0x1bf   :  { %v269_v16 = vmul.f32 %v523_v8, %v268_v12 }
 0x1c0   :  { %v255_v19 = vadd.f32 %v521_v7, %v254_v13 }
 0x1c1   :  { %v270_v20 = vadd.f32 %v523_v8, %v269_v16 }
 0x1c2   :  { %v259_v21 = vsel %vm258_vm6, %v521_v7, %v255_v19 }
 0x1c3   :  { %v274_v24 = vsel %vm273_vm7, %v523_v8, %v270_v20  ;;  %v264_v26 = vsel %vm261_vm8, %v263_v22, %v259_v21 }
 0x1c4   :  { %v279_v27 = vsel %vm276_vm9, %v278_v23, %v274_v24  ;;  %v281_v29 = vmul.f32 2.0, %v264_v26 }
 0x1c5   :  { %v282_v28 = vmul.f32 2.0, %v279_v27 }
 0x1c7   :  { %v285_v30 = vrot.slane %v282_v28, 7 }
 0x1c9   :  { %v287_v32 = vsel %vm286_vm10, %v281_v29, %v285_v30 }
 0x1ca   :  { %293 = vst.msk [vmem:[#allocation11] sm:$0x3] %vm939_vm11, %v287_v32 }
 0x1cb   :  { %470 = dma.vmem_to_hbm [thread:$0]  %s466_s6, 32, %s468_s12, [#allocation4]  }
 0x22f   :  { %v411_v35 = vpop.f32.mrf.mxu0 }
 0x230   :  { %v412_v36 = vadd.f32 %v411_v35, %v368_v34 }
 0x232   :  { %v506_v37 = vmul.f32 -1.442695, %v412_v36 }
 0x234   :  { %524 = vpow2.f32 %v506_v37 }
 0x235   :  { %v391_v39 = vpop.f32.mrf.mxu3 }
 0x236   :  { %v392_v40 = vadd.f32 %v391_v39, %v367_v38 }
 0x238   :  { %v505_v41 = vmul.f32 -1.442695, %v392_v40 }
 0x23a   :  { %v525_v42 = vpop.eup %524  ;;  %526 = vpow2.f32 %v505_v41 }
 0x23b   :  { %v421_v43 = vadd.f32 1.0, %v525_v42 }
 0x23d   :  { %528 = vrcp.f32 %v421_v43  ;;  %v448_v49 = vand.u32 2147483648, %v421_v43  ;;  %v446_v51 = vand.u32 2147483647, %v421_v43  ;;  %vm442_vm13 = vweird.f32 %v421_v43 }
 0x23f   :  { %v449_v55 = vor.u32 1.1754944e-38, %v448_v49  ;;  %vm447_vm15 = vcmp.eq.f32.partialorder %v446_v51, 8.507059e+37 }
 0x240   :  { %v527_v44 = vpop.eup %526 }
 0x241   :  { %v420_v45 = vadd.f32 1.0, %v527_v44 }
 0x243   :  { %v529_v46 = vpop.eup %528  ;;  %530 = vrcp.f32 %v420_v45  ;;  %v433_v58 = vand.u32 2147483648, %v420_v45  ;;  %v431_v61 = vand.u32 2147483647, %v420_v45  ;;  %vm427_vm1 = vweird.f32 %v420_v45 }
 0x244   :  { %v438_v47 = vmul.f32 %v529_v46, %v421_v43  ;;  %vm443_vm12 = vweird.f32 %v529_v46 }
 0x245   :  { %vm444_vm14 = vmor %vm442_vm13, %vm443_vm12  ;;  %v434_v0 = vor.u32 1.1754944e-38, %v433_v58  ;;  %vm432_vm3 = vcmp.eq.f32.partialorder %v431_v61, 8.507059e+37 }
 0x246   :  { %v439_v48 = vsub.f32 1.0, %v438_v47 }
 0x248   :  { %v440_v50 = vmul.f32 %v529_v46, %v439_v48 }
 0x249   :  { %v531_v52 = vpop.eup %530 }
 0x24a   :  { %v423_v53 = vmul.f32 %v531_v52, %v420_v45  ;;  %v441_v54 = vadd.f32 %v529_v46, %v440_v50  ;;  %vm428_vm0 = vweird.f32 %v531_v52 }
 0x24b   :  { %vm429_vm2 = vmor %vm427_vm1, %vm428_vm0 }
 0x24c   :  { %v424_v56 = vsub.f32 1.0, %v423_v53  ;;  %v445_v57 = vsel %vm444_vm14, %v529_v46, %v441_v54 }
 0x24d   :  { %v450_v59 = vsel %vm447_vm15, %v449_v55, %v445_v57 }
 0x24e   :  { %v425_v60 = vmul.f32 %v531_v52, %v424_v56  ;;  %v453_v63 = vmul.f32 2.0, %v450_v59 }
 0x250   :  { %v426_v62 = vadd.f32 %v531_v52, %v425_v60  ;;  %v456_v4 = vrot.slane %v453_v63, 7 }
 0x252   :  { %v430_v1 = vsel %vm429_vm2, %v531_v52, %v426_v62 }
 0x253   :  { %v435_v2 = vsel %vm432_vm3, %v434_v0, %v430_v1 }
 0x254   :  { %v452_v3 = vmul.f32 2.0, %v435_v2 }
 0x256   :  { %v457_v5 = vsel %vm286_vm10, %v452_v3, %v456_v4 }
 0x257   :  { %459 = vst.msk [vmem:[#allocation12] sm:$0x3] %vm939_vm11, %v457_v5 }
 0x258   :  { %481 = dma.vmem_to_hbm [thread:$0]  %s477_s14, 32, %s479_s21, [#allocation13]  }
 0x259   :  { %706 = dma.done.wait [#allocation4], 32  }
 0x25a   :  { %707 = vsyncadd [#allocation4], 4294967264 }
 0x25b   :  { %708 = dma.done.wait [#allocation13], 32  }
 0x25c   :  { %709 = vsyncadd [#allocation13], 4294967264 }
 0x25d   :  { %490 = vsyncpa [#allocation3], 1 }
 0x25e   :  { %491 = vsyncpa [#allocation6], 1 }
 0x25f   :  { %492 = vsyncpa [#allocation9], 1 }
 0x260   :  { %493 = vsyncpa [#allocation4], 1 }
 0x261   :  { %494 = vsyncpa [#allocation13], 1 }

</bundles_post_ra>
